<compile_context>
chip_gen: v5e
topology: v5e:2x2
jax: 0.10.0
libtpu: 0.0.40
codegen_flags: <defaults>
</compile_context>

<pallas_src>
import functools

import jax
import jax.numpy as jnp
from jax.experimental import pallas as pl
from jax.experimental.pallas import tpu as pltpu


def _round_up(x, m):
    return ((x + m - 1) // m) * m


# --------------------------------------------------------------------------- #
# Kernel: one lane-dense affine map per batch tile.
#   x_ref : (tb, K)        f32   K = pack * encoding_dim (pack batch rows are
#                                 concatenated along the lane axis)
#   w_ref : (K, out_cols)  bf16  block-diagonal replication of collapsed W_eff
#   b_ref : (1, out_cols)  f32   b_eff tiled `pack` times
#   o_ref : (tb, out_cols) f32   out_cols is a multiple of 128 -> unmasked vst
# --------------------------------------------------------------------------- #
def emitter_kernel(x_ref, w_ref, b_ref, o_ref):
    x = x_ref[...].astype(jnp.bfloat16)          # in-kernel cast (VPU, free under mem bound)
    o_ref[...] = (
        jnp.dot(x, w_ref[...], preferred_element_type=jnp.float32) + b_ref[...]
    )


@functools.partial(jax.jit, static_argnames=("design_dim", "tile_rows"))
def emitter_forward(r, w_blk, b_blk, design_dim, tile_rows=4096):
    """r: [B, encoding_dim] f32 -> [B, design_dim] f32 (EmitterNetwork.forward)."""
    B, enc = r.shape
    K, out_cols = w_blk.shape
    pack = K // enc                              # batch rows packed per matmul row

    # Pad batch to a multiple of `pack` (cheap: at most pack-1 rows).
    Bp = _round_up(B, pack)
    x = r if Bp == B else jnp.pad(r, ((0, Bp - B), (0, 0)))
    rows = Bp // pack
    xp = x.reshape(rows, K)                      # row j = [x_{pj}, ..., x_{pj+pack-1}]

    # ---- batch-tile selection -------------------------------------------------
    # Cap the tile so one x tile stays <= ~8 MiB (double-buffered x + out + bf16
    # temp stays well inside the 40 MiB scoped limit below on v5e/v6e/v7x).
    cap = max(8, ((8 << 20) // (4 * K)) // 8 * 8)
    trows = max(8, min(tile_rows, cap))
    if rows <= trows:
        if rows >= 16:
            tb = _round_up(pl.cdiv(rows, 2), 8)  # >=2 grid steps -> v7x megacore split
        else:
            tb = rows                            # block == full dim (always legal)
    else:
        tb = trows                               # multiple of 8
    grid = pl.cdiv(rows, tb)

    out = pl.pallas_call(
        emitter_kernel,
        out_shape=jax.ShapeDtypeStruct((rows, out_cols), jnp.float32),
        grid=(grid,),
        in_specs=[
            pl.BlockSpec((tb, K), lambda i: (i, 0)),         # x: tiled over batch
            pl.BlockSpec((K, out_cols), lambda i: (0, 0)),   # W: VMEM-resident
            pl.BlockSpec((1, out_cols), lambda i: (0, 0)),   # b: VMEM-resident
        ],
        out_specs=pl.BlockSpec((tb, out_cols), lambda i: (i, 0)),
        compiler_params=pltpu.CompilerParams(
            dimension_semantics=("parallel",),               # batch axis across TCs (v7x)
            vmem_limit_bytes=40 * 1024 * 1024,               # headroom over v5e's 16 MiB default
        ),
    )(xp, w_blk, b_blk)

    if pack > 1:
        # out_cols == pack * design_dim exactly; unpack rows (cheap reshape).
        return out.reshape(Bp, design_dim)[:B]
    return out[:B, :design_dim]


def init_params(key, encoding_dim, design_dim, hidden_dim):
    """Deterministic init mimicking nn.Linear's U(-1/sqrt(fan_in), 1/sqrt(fan_in)).

    Returns the logical (f32) parameters, equivalent to the PyTorch module
    with hidden_depth=2.
    """
    ks = jax.random.split(key, 6)

    def linear(kw, kb, fan_in, fan_out):
        bound = 1.0 / jnp.sqrt(jnp.float32(fan_in))
        w = jax.random.uniform(kw, (fan_in, fan_out), jnp.float32, -bound, bound)
        b = jax.random.uniform(kb, (1, fan_out), jnp.float32, -bound, bound)
        return w, b

    w1, b1 = linear(ks[0], ks[1], encoding_dim, hidden_dim)
    w2, b2 = linear(ks[2], ks[3], hidden_dim, hidden_dim)
    w3, b3 = linear(ks[4], ks[5], hidden_dim, design_dim)
    return (w1, b1, w2, b2, w3, b3)


def collapse_params(params):
    """Identity activations => the MLP is a single affine map (exact f32 matmuls)."""
    w1, b1, w2, b2, w3, b3 = params
    hp = jax.lax.Precision.HIGHEST
    w_eff = jnp.dot(jnp.dot(w1, w2, precision=hp), w3, precision=hp)
    b_eff = jnp.dot(jnp.dot(b1, w2, precision=hp) + b2, w3, precision=hp) + b3
    return w_eff, b_eff


def prepare_params(params):
    """Kernel layout: bf16 block-diagonal collapsed weight + f32 tiled bias.

    pack = 128 // design_dim batch rows are packed per matmul row when
    design_dim divides 128, making the output lane-dense with zero padding.
    Otherwise fall back to zero-padding the design dim to a multiple of 128
    (padded bias lanes stay zero so the wrapper slice is exact).
    """
    w_eff, b_eff = collapse_params(params)
    _, design = w_eff.shape

    if design % 128 == 0:
        pack = 1
    elif 128 % design == 0:
        pack = 128 // design
    else:
        pack = 1  # TODO(synk): generic row-packing for design dims that don't divide 128
        pad = _round_up(design, 128) - design
        w_eff = jnp.pad(w_eff, ((0, 0), (0, pad)))
        b_eff = jnp.pad(b_eff, ((0, 0), (0, pad)))

    if pack > 1:
        w_blk = jnp.kron(jnp.eye(pack, dtype=w_eff.dtype), w_eff)  # block-diagonal
    else:
        w_blk = w_eff
    b_blk = jnp.tile(b_eff, (1, pack))
    return w_blk.astype(jnp.bfloat16), b_blk.astype(jnp.float32)


if __name__ == "__main__":
    # Small shapes consistent with the module defaults (hidden_dim=128, hidden_depth=2).
    batch = 8
    encoding_dim = 32
    design_dim = 16
    hidden_dim = 128

    key = jax.random.PRNGKey(0)
    k_in, k_in2, k_par = jax.random.split(key, 3)

    params = init_params(k_par, encoding_dim, design_dim, hidden_dim)
    w_blk, b_blk = prepare_params(params)

    r = jax.random.normal(k_in, (batch, encoding_dim), dtype=jnp.float32)
    out = emitter_forward(r, w_blk, b_blk, design_dim=design_dim)
    jax.block_until_ready(out)
    assert out.shape == (batch, design_dim)

    # Reference 1: same numerics as the kernel (bf16 input/weight, f32 accumulation)
    # on the collapsed affine map.
    w_eff, b_eff = collapse_params(params)
    ref_bf16 = (
        jnp.dot(r.astype(jnp.bfloat16), w_eff.astype(jnp.bfloat16),
                preferred_element_type=jnp.float32) + b_eff
    )
    assert jnp.allclose(out, ref_bf16, atol=2e-3, rtol=2e-3), \
        float(jnp.max(jnp.abs(out - ref_bf16)))

    # Reference 2: the PyTorch module's pure-f32 semantics (error = bf16 rounding only).
    hp = jax.lax.Precision.HIGHEST
    w1, b1, w2, b2, w3, b3 = params
    h = jnp.dot(r, w1, precision=hp) + b1
    h = jnp.dot(h, w2, precision=hp) + b2
    ref_f32 = jnp.dot(h, w3, precision=hp) + b3
    assert jnp.allclose(out, ref_f32, atol=3e-2, rtol=3e-2), \
        float(jnp.max(jnp.abs(out - ref_f32)))

    # Second shape: batch not a multiple of pack (wrapper pads 6 rows) and a
    # 2-step grid (exercises the v7x megacore path).
    r2 = jax.random.normal(k_in2, (250, encoding_dim), dtype=jnp.float32)
    out2 = emitter_forward(r2, w_blk, b_blk, design_dim=design_dim)
    jax.block_until_ready(out2)
    ref2 = (
        jnp.dot(r2.astype(jnp.bfloat16), w_eff.astype(jnp.bfloat16),
                preferred_element_type=jnp.float32) + b_eff
    )
    assert out2.shape == (250, design_dim)
    assert jnp.allclose(out2, ref2, atol=2e-3, rtol=2e-3)

    print("KERNEL_OK")
</pallas_src>

<mosaic_0001>
module attributes {stable_mosaic.version = 11 : i64} {
  func.func @emitter_kernel(%arg0: i32, %arg1: memref<1x256xf32, #tpu.memory_space<vmem>>, %arg2: memref<256x128xbf16, #tpu.memory_space<vmem>>, %arg3: memref<1x128xf32, #tpu.memory_space<vmem>>, %arg4: memref<1x128xf32, #tpu.memory_space<vmem>>) attributes {dimension_semantics = [#tpu.dimension_semantics<parallel>], iteration_bounds = array<i64: 1>, scalar_prefetch = 0 : i64, scratch_operands = 0 : i64, tpu.core_type = #tpu.core_type<tc>, window_params = [{transform_indices = @transform_0, window_bounds = array<i64: 1, 256>}, {pipeline_mode = #tpu.pipeline_mode<synchronous>, transform_indices = @transform_1, window_bounds = array<i64: 256, 128>}, {pipeline_mode = #tpu.pipeline_mode<synchronous>, transform_indices = @transform_2, window_bounds = array<i64: 1, 128>}, {transform_indices = @transform_3, window_bounds = array<i64: 1, 128>}]} {
    %c0 = arith.constant 0 : index
    %c0_0 = arith.constant 0 : index
    %0 = vector.load %arg1[%c0, %c0_0] : memref<1x256xf32, #tpu.memory_space<vmem>>, vector<1x256xf32>
    %1 = arith.truncf %0 : vector<1x256xf32> to vector<1x256xbf16>
    %c0_1 = arith.constant 0 : index
    %c0_2 = arith.constant 0 : index
    %2 = vector.load %arg2[%c0_1, %c0_2] : memref<256x128xbf16, #tpu.memory_space<vmem>>, vector<256x128xbf16>
    %cst = arith.constant dense<0.000000e+00> : vector<1x128xf32>
    %3 = tpu.matmul %1, %2, %cst {dimension_numbers = #tpu.dot_dimension_numbers<[1], [0], [0], [1], [0, 0, 1, 1], [], []>} : vector<1x256xbf16>, vector<256x128xbf16>, vector<1x128xf32> -> vector<1x128xf32>
    %c0_3 = arith.constant 0 : index
    %c0_4 = arith.constant 0 : index
    %4 = vector.load %arg3[%c0_3, %c0_4] : memref<1x128xf32, #tpu.memory_space<vmem>>, vector<1x128xf32>
    %5 = arith.addf %3, %4 : vector<1x128xf32>
    %c0_5 = arith.constant 0 : index
    %c0_6 = arith.constant 0 : index
    %6 = vector.load %arg4[%c0_5, %c0_6] : memref<1x128xf32, #tpu.memory_space<vmem>>, vector<1x128xf32>
    tpu.vector_store %arg4[%c0_5, %c0_6], %5 {strides = array<i32>} : memref<1x128xf32, #tpu.memory_space<vmem>>, vector<1x128xf32>,
    return
  }
  func.func @transform_0(%arg0: i32) -> (i32, i32) {
    %c0_i32 = arith.constant 0 : i32
    %c0_i32_0 = arith.constant 0 : i32
    return %arg0, %c0_i32 : i32, i32
  }
  func.func @transform_1(%arg0: i32) -> (i32, i32) {
    %c0_i32 = arith.constant 0 : i32
    %c0_i32_0 = arith.constant 0 : i32
    %c0_i32_1 = arith.constant 0 : i32
    return %c0_i32, %c0_i32_0 : i32, i32
  }
  func.func @transform_2(%arg0: i32) -> (i32, i32) {
    %c0_i32 = arith.constant 0 : i32
    %c0_i32_0 = arith.constant 0 : i32
    %c0_i32_1 = arith.constant 0 : i32
    return %c0_i32, %c0_i32_0 : i32, i32
  }
  func.func @transform_3(%arg0: i32) -> (i32, i32) {
    %c0_i32 = arith.constant 0 : i32
    %c0_i32_0 = arith.constant 0 : i32
    return %arg0, %c0_i32 : i32, i32
  }
}

</mosaic_0001>

<bundles_post_ra>
// kernel: emitter_forward.1
= control target key start
LH: loop header
LB: loop body
LE: loop exit
PB: predicated region body
PF: predicated region fallthrough
CT: control target
= control target key end

     0   :  { %8 = vsyncpa [#allocation3], 0  ;;  %s308_s15 = smov [#allocation2]   ;;  %s309_s17 = smov 64   ;;  %s343_s0 = inlined_call_operand.vmem [shape: f32[1,256], index: 0, kind: input, shape index: {}]   ;;  %s344_s1 = inlined_call_operand.hbm [shape: bf16[256,128], index: 1, kind: input, shape index: {}]   ;;  %s345_s2 = inlined_call_operand.vmem [shape: f32[1,128], index: 2, kind: input, shape index: {}]   ;;  %s346_s3 = inlined_call_operand.vmem [shape: f32[1,128], index: 3, kind: output, shape index: {}]  }
   0x1   :  { %s15_s14 = sshll.u32 %s344_s1, 4  ;;  %s17_s16 = sshll.u32 %s308_s15, 4  ;;  %s16_s14 = int_to_ptr.hbm [resolvable:$true] %s15_s14  ;;  %s18_s16 = int_to_ptr.vmem [resolvable:$true] %s17_s16 }
   0x2   :  { %s310_s18 = smov 4  }
   0x3   :  { %23 = dma.hbm_to_vmem [thread:$0]  %s16_s14, 2048, %s18_s16, [#allocation3], %s309_s17, %s309_s17, %s310_s18  }
   0x4   :  { %306 = dma.done.wait [#allocation3], 2048  }
   0x5   :  { %307 = vsyncadd [#allocation3], 4294965248  ;;  %v270_v0 = vld [vmem:[#allocation2 + $0x38] sm:$0xff]  ;;  %v269_v2 = vld [vmem:[#allocation2 + $0x30] sm:$0xff] }
   0x6   :  { %v278_v1 = vld [vmem:[#allocation2 + $0x78] sm:$0xff]  ;;  %167 = vmatpush.bf16.msra.mxu0 %v270_v0  ;;  %v277_v3 = vld [vmem:[#allocation2 + $0x70] sm:$0xff]  ;;  %v268_v4 = vld [vmem:[#allocation2 + $0x28] sm:$0xff] }
   0x7   :  { %180 = vmatpush.bf16.msra.mxu1 %v278_v1  ;;  %v276_v5 = vld [vmem:[#allocation2 + $0x68] sm:$0xff]  ;;  %v267_v6 = vld [vmem:[#allocation2 + $0x20] sm:$0xff]  ;;  %v266_v8 = vld [vmem:[#allocation2 + $0x18] sm:$0xff] }
   0x8   :  { %v275_v7 = vld [vmem:[#allocation2 + $0x60] sm:$0xff]  ;;  %v274_v9 = vld [vmem:[#allocation2 + $0x58] sm:$0xff]  ;;  %v265_v10 = vld [vmem:[#allocation2 + $0x10] sm:$0xff] }
   0x9   :  { %v273_v11 = vld [vmem:[#allocation2 + $0x50] sm:$0xff]  ;;  %v264_v12 = vld [vmem:[#allocation2 + $0x8] sm:$0xff]  ;;  %v30_v14 = vld [vmem:[%s343_s0] sm:$0x3] }
   0xa   :  { %168 = vmatpush.bf16.msra.mxu0 %v269_v2  ;;  %v272_v13 = vld [vmem:[#allocation2 + $0x48] sm:$0xff]  ;;  %v32_v15 = vperm.slane %v30_v14, 0  ;;  %v33_v16 = vperm.slane %v30_v14, 1  ;;  %v263_v17 = vld [vmem:[#allocation2] sm:$0xff] }
   0xb   :  { %181 = vmatpush.bf16.msra.mxu1 %v277_v3  ;;  %v271_v18 = vld [vmem:[#allocation2 + $0x40] sm:$0xff] }
   0xc   :  { %v36_v19 = vpack.c.bf16 %v32_v15, %v32_v15  ;;  %v37_v20 = vpack.c.bf16 %v33_v16, %v33_v16  ;;  %v70_v21 = vld [vmem:[%s345_s2] sm:$0x1] }
   0xe   :  { %169 = vmatpush.bf16.msra.mxu0 %v268_v4 }
   0xf   :  { %182 = vmatpush.bf16.msra.mxu1 %v276_v5 }
  0x12   :  { %170 = vmatpush.bf16.msra.mxu0 %v267_v6 }
  0x13   :  { %183 = vmatpush.bf16.msra.mxu1 %v275_v7 }
  0x16   :  { %171 = vmatpush.bf16.msra.mxu0 %v266_v8 }
  0x17   :  { %184 = vmatpush.bf16.msra.mxu1 %v274_v9 }
  0x1a   :  { %172 = vmatpush.bf16.msra.mxu0 %v265_v10 }
  0x1b   :  { %185 = vmatpush.bf16.msra.mxu1 %v273_v11 }
  0x1e   :  { %173 = vmatpush.bf16.msra.mxu0 %v264_v12 }
  0x1f   :  { %186 = vmatpush.bf16.msra.mxu1 %v272_v13 }
  0x22   :  { %174 = vmatpush.bf16.msra.mxu0 %v263_v17 }
  0x23   :  { %187 = vmatpush.bf16.msra.mxu1 %v271_v18 }
  0x25   :  { %175 = vmatmul.bf16.vlgmr.msra.gmra.mxu0 %v36_v19 }
  0x26   :  { %188 = vmatmul.bf16.vlgmr.msra.gmra.mxu1 %v37_v20 }
  0xa2   :  { %v176_v22 = vpop.f32.mrf.mxu0 }
  0xa3   :  { %v189_v23 = vpop.f32.mrf.mxu1  ;;  %v177_v24 = vadd.f32 %v176_v22, %v70_v21 }
  0xa5   :  { %v190_v25 = vadd.f32 %v189_v23, %v177_v24 }
  0xa7   :  { %193 = vst [vmem:[%s346_s3] sm:$0x1] %v190_v25 }
  0xaa   :  { %v178_v26 = vpop.f32.mrf.mxu0 }
  0xab   :  { %v191_v27 = vpop.f32.mrf.mxu1 }
  0xac   :  { %198 = vsyncpa [#allocation3], 1 }

</bundles_post_ra>
